<compile_context>
chip_gen: v7x
topology: tpu7x:2x2x1
jax: 0.10.0
libtpu: 0.0.40
codegen_flags: <defaults>
</compile_context>

<pallas_src>
import jax
import jax.numpy as jnp
from jax.experimental import pallas as pl
from jax.experimental.pallas import tpu as pltpu  # noqa: F401  (kept for TPU-specific tuning hooks)

NEG_SLOPE = 0.01  # torch.nn.LeakyReLU default negative_slope


def _leaky_relu(x):
    return jnp.where(x > 0, x, NEG_SLOPE * x)


def _realnvp_kernel(mask_ref,
                    w1_ref, b1_ref,      # (L, D, 2H), (L, 1, 2H)   [scale | train] layer 1
                    w2_ref, b2_ref,      # (L, 2H, 2H), (L, 1, 2H)  block-diag layer 2
                    w3_ref, b3_ref,      # (L, 2H, 2D), (L, 1, 2D)  block-diag layer 3
                    x_ref,
                    z_out, ld_out):
    L = mask_ref.shape[0]
    D = x_ref.shape[1]

    z = x_ref[...].astype(jnp.float32)                 # (B, D)
    ld = jnp.zeros((z.shape[0], 1), jnp.float32)       # (B, 1)

    # forward() iterates the coupling layers in reverse.
    for i in reversed(range(L)):
        m = mask_ref[i]                                # (1, D)
        one_m = 1.0 - m
        z_masked = m * z                               # mask * z

        # Fused scale_net / train_net: activations are [h | g] of width 2H.
        hg = _leaky_relu(
            jnp.dot(z_masked, w1_ref[i], preferred_element_type=jnp.float32)
            + b1_ref[i])
        hg = _leaky_relu(
            jnp.dot(hg, w2_ref[i], preferred_element_type=jnp.float32)
            + b2_ref[i])
        st = (jnp.dot(hg, w3_ref[i], preferred_element_type=jnp.float32)
              + b3_ref[i])                             # (B, 2D) = [s_pre | t_pre]

        s = jnp.tanh(st[:, :D]) * one_m                # scale_net(z_) * (1 - mask)
        t = st[:, D:] * one_m                          # train_net(z_) * (1 - mask)

        # z = (1 - mask) * (z - t) * exp(-s) + z_
        z = one_m * (z - t) * jnp.exp(-s) + z_masked
        # log_det_J -= s.sum(dim=1)
        ld = ld - jnp.sum(s, axis=1, keepdims=True)

    z_out[...] = z.astype(z_out.dtype)
    ld_out[...] = ld


def _pack_params(sp, tp):
    """Pack scale/train MLP weights into fused per-layer slabs."""
    L, D, H = sp["w1"].shape
    zHH = jnp.zeros((L, H, H), jnp.float32)
    zHD = jnp.zeros((L, H, D), jnp.float32)

    w1 = jnp.concatenate([sp["w1"], tp["w1"]], axis=-1)               # (L, D, 2H)
    b1 = jnp.concatenate([sp["b1"], tp["b1"]], axis=-1)[:, None, :]   # (L, 1, 2H)
    w2 = jnp.concatenate(
        [jnp.concatenate([sp["w2"], zHH], axis=-1),
         jnp.concatenate([zHH, tp["w2"]], axis=-1)], axis=-2)         # (L, 2H, 2H)
    b2 = jnp.concatenate([sp["b2"], tp["b2"]], axis=-1)[:, None, :]   # (L, 1, 2H)
    w3 = jnp.concatenate(
        [jnp.concatenate([sp["w3"], zHD], axis=-1),
         jnp.concatenate([zHD, tp["w3"]], axis=-1)], axis=-2)         # (L, 2H, 2D)
    b3 = jnp.concatenate([sp["b3"], tp["b3"]], axis=-1)[:, None, :]   # (L, 1, 2D)
    return w1, b1, w2, b2, w3, b3


def realnvp_forward(x, mask, scale_params, train_params):
    """x: (B, D) f32; mask: (L, D) f32; params: dicts of stacked per-layer weights."""
    B, D = x.shape
    L = mask.shape[0]
    w1, b1, w2, b2, w3, b3 = _pack_params(scale_params, train_params)
    mask3 = mask.reshape(L, 1, D)

    # Grid-less call: every operand is a single full-array VMEM block (total
    # footprint ~80 KB), so there is no per-step pipeline or DMA fan-out.
    # TODO(synk): if D/H/B are scaled up (e.g. D~784, H~1024), reintroduce a
    # batch-parallel grid axis and re-budget weight tiles against v7x's 64 MiB VMEM.
    z, log_det = pl.pallas_call(
        _realnvp_kernel,
        out_shape=(jax.ShapeDtypeStruct((B, D), x.dtype),
                   jax.ShapeDtypeStruct((B, 1), jnp.float32)),
    )(mask3, w1, b1, w2, b2, w3, b3, x)
    return z, log_det.reshape(B)


def realnvp_forward_ref(x, mask, sp, tp):
    """Pure-JAX reference mirroring the PyTorch forward exactly."""
    z = x
    log_det = jnp.zeros((x.shape[0],), jnp.float32)
    L = mask.shape[0]
    for i in reversed(range(L)):
        m = mask[i]
        z_ = m * z
        h = _leaky_relu(z_ @ sp["w1"][i] + sp["b1"][i])
        h = _leaky_relu(h @ sp["w2"][i] + sp["b2"][i])
        s = jnp.tanh(h @ sp["w3"][i] + sp["b3"][i]) * (1.0 - m)
        g = _leaky_relu(z_ @ tp["w1"][i] + tp["b1"][i])
        g = _leaky_relu(g @ tp["w2"][i] + tp["b2"][i])
        t = (g @ tp["w3"][i] + tp["b3"][i]) * (1.0 - m)
        z = (1.0 - m) * (z - t) * jnp.exp(-s) + z_
        log_det = log_det - jnp.sum(s, axis=1)
    return z, log_det


def _init_params(key, L, D, H):
    ks = jax.random.split(key, 6)
    return {
        "w1": 0.1 * jax.random.normal(ks[0], (L, D, H), jnp.float32),
        "b1": 0.1 * jax.random.normal(ks[1], (L, H), jnp.float32),
        "w2": 0.1 * jax.random.normal(ks[2], (L, H, H), jnp.float32),
        "b2": 0.1 * jax.random.normal(ks[3], (L, H), jnp.float32),
        "w3": 0.1 * jax.random.normal(ks[4], (L, H, D), jnp.float32),
        "b3": 0.1 * jax.random.normal(ks[5], (L, D), jnp.float32),
    }


if __name__ == "__main__":
    B, D, H, L = 8, 4, 32, 4   # batch, feature dim, hidden, coupling layers

    key = jax.random.PRNGKey(0)
    kx, ks, kt = jax.random.split(key, 3)

    x = jax.random.normal(kx, (B, D), jnp.float32)
    # Alternating binary coupling masks (L, D), classic RealNVP setup.
    base = jnp.arange(D) % 2
    mask = jnp.stack([(base + i) % 2 for i in range(L)]).astype(jnp.float32)

    scale_params = _init_params(ks, L, D, H)
    train_params = _init_params(kt, L, D, H)

    z, log_det = realnvp_forward(x, mask, scale_params, train_params)
    jax.block_until_ready((z, log_det))

    z_ref, ld_ref = realnvp_forward_ref(x, mask, scale_params, train_params)
    assert jnp.allclose(z, z_ref, rtol=1e-5, atol=1e-5), "z mismatch vs reference"
    assert jnp.allclose(log_det, ld_ref, rtol=1e-5, atol=1e-5), "log_det mismatch"

    # TODO(synk): get_loss / generate / sample (prior log_prob & sampling) are
    # not part of forward() and are left to plain JAX if needed.
    print("KERNEL_OK")
</pallas_src>

<mosaic_0001>
module attributes {stable_mosaic.version = 11 : i64} {
  func.func @_realnvp_kernel(%arg0: memref<4x1x4xf32, #tpu.memory_space<vmem>>, %arg1: memref<4x4x64xf32, #tpu.memory_space<vmem>>, %arg2: memref<4x1x64xf32, #tpu.memory_space<vmem>>, %arg3: memref<4x64x64xf32, #tpu.memory_space<vmem>>, %arg4: memref<4x1x64xf32, #tpu.memory_space<vmem>>, %arg5: memref<4x64x8xf32, #tpu.memory_space<vmem>>, %arg6: memref<4x1x8xf32, #tpu.memory_space<vmem>>, %arg7: memref<8x4xf32, #tpu.memory_space<vmem>>, %arg8: memref<8x4xf32, #tpu.memory_space<vmem>>, %arg9: memref<8x1xf32, #tpu.memory_space<vmem>>) attributes {dimension_semantics = [], scalar_prefetch = 0 : i64, scratch_operands = 0 : i64, tpu.core_type = #tpu.core_type<tc>} {
    %c0 = arith.constant 0 : index
    %c0_0 = arith.constant 0 : index
    %0 = vector.load %arg7[%c0, %c0_0] : memref<8x4xf32, #tpu.memory_space<vmem>>, vector<8x4xf32>
    %cst = arith.constant 0.000000e+00 : f32
    %1 = vector.broadcast %cst : f32 to vector<8x1xf32>
    %c3 = arith.constant 3 : index
    %c0_1 = arith.constant 0 : index
    %c0_2 = arith.constant 0 : index
    %2 = vector.load %arg0[%c3, %c0_1, %c0_2] : memref<4x1x4xf32, #tpu.memory_space<vmem>>, vector<1x1x4xf32>
    %3 = vector.shape_cast %2 : vector<1x1x4xf32> to vector<1x4xf32>
    %cst_3 = arith.constant 1.000000e+00 : f32
    %4 = vector.broadcast %cst_3 : f32 to vector<1x4xf32>
    %5 = arith.subf %4, %3 : vector<1x4xf32>
    %6 = vector.broadcast %3 : vector<1x4xf32> to vector<8x4xf32>
    %7 = arith.mulf %6, %0 : vector<8x4xf32>
    %c3_4 = arith.constant 3 : index
    %c0_5 = arith.constant 0 : index
    %c0_6 = arith.constant 0 : index
    %8 = vector.load %arg1[%c3_4, %c0_5, %c0_6] : memref<4x4x64xf32, #tpu.memory_space<vmem>>, vector<1x4x64xf32>
    %9 = vector.shape_cast %8 : vector<1x4x64xf32> to vector<4x64xf32>
    %cst_7 = arith.constant dense<0.000000e+00> : vector<8x64xf32>
    %10 = tpu.matmul %7, %9, %cst_7 {dimension_numbers = #tpu.dot_dimension_numbers<[1], [0], [0], [1], [0, 0, 1, 1], [], []>} : vector<8x4xf32>, vector<4x64xf32>, vector<8x64xf32> -> vector<8x64xf32>
    %c3_8 = arith.constant 3 : index
    %c0_9 = arith.constant 0 : index
    %c0_10 = arith.constant 0 : index
    %11 = vector.load %arg2[%c3_8, %c0_9, %c0_10] : memref<4x1x64xf32, #tpu.memory_space<vmem>>, vector<1x1x64xf32>
    %12 = vector.shape_cast %11 : vector<1x1x64xf32> to vector<1x64xf32>
    %13 = vector.broadcast %12 : vector<1x64xf32> to vector<8x64xf32>
    %14 = arith.addf %10, %13 : vector<8x64xf32>
    %cst_11 = arith.constant 0.000000e+00 : f32
    %15 = vector.broadcast %cst_11 : f32 to vector<8x64xf32>
    %16 = arith.cmpf ogt, %14, %15 : vector<8x64xf32>
    %cst_12 = arith.constant 0.00999999977 : f32
    %17 = vector.broadcast %cst_12 : f32 to vector<8x64xf32>
    %18 = arith.mulf %17, %14 : vector<8x64xf32>
    %19 = arith.select %16, %14, %18 : vector<8x64xi1>, vector<8x64xf32>
    %c3_13 = arith.constant 3 : index
    %c0_14 = arith.constant 0 : index
    %c0_15 = arith.constant 0 : index
    %20 = vector.load %arg3[%c3_13, %c0_14, %c0_15] : memref<4x64x64xf32, #tpu.memory_space<vmem>>, vector<1x64x64xf32>
    %21 = vector.shape_cast %20 : vector<1x64x64xf32> to vector<64x64xf32>
    %cst_16 = arith.constant dense<0.000000e+00> : vector<8x64xf32>
    %22 = tpu.matmul %19, %21, %cst_16 {dimension_numbers = #tpu.dot_dimension_numbers<[1], [0], [0], [1], [0, 0, 1, 1], [], []>} : vector<8x64xf32>, vector<64x64xf32>, vector<8x64xf32> -> vector<8x64xf32>
    %c3_17 = arith.constant 3 : index
    %c0_18 = arith.constant 0 : index
    %c0_19 = arith.constant 0 : index
    %23 = vector.load %arg4[%c3_17, %c0_18, %c0_19] : memref<4x1x64xf32, #tpu.memory_space<vmem>>, vector<1x1x64xf32>
    %24 = vector.shape_cast %23 : vector<1x1x64xf32> to vector<1x64xf32>
    %25 = vector.broadcast %24 : vector<1x64xf32> to vector<8x64xf32>
    %26 = arith.addf %22, %25 : vector<8x64xf32>
    %cst_20 = arith.constant 0.000000e+00 : f32
    %27 = vector.broadcast %cst_20 : f32 to vector<8x64xf32>
    %28 = arith.cmpf ogt, %26, %27 : vector<8x64xf32>
    %cst_21 = arith.constant 0.00999999977 : f32
    %29 = vector.broadcast %cst_21 : f32 to vector<8x64xf32>
    %30 = arith.mulf %29, %26 : vector<8x64xf32>
    %31 = arith.select %28, %26, %30 : vector<8x64xi1>, vector<8x64xf32>
    %c3_22 = arith.constant 3 : index
    %c0_23 = arith.constant 0 : index
    %c0_24 = arith.constant 0 : index
    %32 = vector.load %arg5[%c3_22, %c0_23, %c0_24] : memref<4x64x8xf32, #tpu.memory_space<vmem>>, vector<1x64x8xf32>
    %33 = vector.shape_cast %32 : vector<1x64x8xf32> to vector<64x8xf32>
    %cst_25 = arith.constant dense<0.000000e+00> : vector<8x8xf32>
    %34 = tpu.matmul %31, %33, %cst_25 {dimension_numbers = #tpu.dot_dimension_numbers<[1], [0], [0], [1], [0, 0, 1, 1], [], []>} : vector<8x64xf32>, vector<64x8xf32>, vector<8x8xf32> -> vector<8x8xf32>
    %c3_26 = arith.constant 3 : index
    %c0_27 = arith.constant 0 : index
    %c0_28 = arith.constant 0 : index
    %35 = vector.load %arg6[%c3_26, %c0_27, %c0_28] : memref<4x1x8xf32, #tpu.memory_space<vmem>>, vector<1x1x8xf32>
    %36 = vector.shape_cast %35 : vector<1x1x8xf32> to vector<1x8xf32>
    %37 = vector.broadcast %36 : vector<1x8xf32> to vector<8x8xf32>
    %38 = arith.addf %34, %37 : vector<8x8xf32>
    %39 = vector.extract_strided_slice %38 {offsets = [0, 0], sizes = [8, 4], strides = [1, 1]} : vector<8x8xf32> to vector<8x4xf32>
    %40 = math.tanh %39 : vector<8x4xf32>
    %41 = vector.broadcast %5 : vector<1x4xf32> to vector<8x4xf32>
    %42 = arith.mulf %40, %41 : vector<8x4xf32>
    %43 = vector.extract_strided_slice %38 {offsets = [0, 4], sizes = [8, 4], strides = [1, 1]} : vector<8x8xf32> to vector<8x4xf32>
    %44 = vector.broadcast %5 : vector<1x4xf32> to vector<8x4xf32>
    %45 = arith.mulf %43, %44 : vector<8x4xf32>
    %46 = arith.subf %0, %45 : vector<8x4xf32>
    %47 = vector.broadcast %5 : vector<1x4xf32> to vector<8x4xf32>
    %48 = arith.mulf %47, %46 : vector<8x4xf32>
    %cst_29 = arith.constant 0.000000e+00 : f32
    %49 = vector.broadcast %cst_29 : f32 to vector<8x4xf32>
    %50 = arith.subf %49, %42 : vector<8x4xf32>
    %51 = math.exp %50 : vector<8x4xf32>
    %52 = arith.mulf %48, %51 : vector<8x4xf32>
    %53 = arith.addf %52, %7 : vector<8x4xf32>
    %cst_30 = arith.constant dense<0.000000e+00> : vector<8xf32>
    %54 = vector.multi_reduction <add>, %42, %cst_30 [1] : vector<8x4xf32> to vector<8xf32>
    %55 = vector.shape_cast %54 : vector<8xf32> to vector<8x1xf32>
    %56 = arith.subf %1, %55 : vector<8x1xf32>
    %c2 = arith.constant 2 : index
    %c0_31 = arith.constant 0 : index
    %c0_32 = arith.constant 0 : index
    %57 = vector.load %arg0[%c2, %c0_31, %c0_32] : memref<4x1x4xf32, #tpu.memory_space<vmem>>, vector<1x1x4xf32>
    %58 = vector.shape_cast %57 : vector<1x1x4xf32> to vector<1x4xf32>
    %cst_33 = arith.constant 1.000000e+00 : f32
    %59 = vector.broadcast %cst_33 : f32 to vector<1x4xf32>
    %60 = arith.subf %59, %58 : vector<1x4xf32>
    %61 = vector.broadcast %58 : vector<1x4xf32> to vector<8x4xf32>
    %62 = arith.mulf %61, %53 : vector<8x4xf32>
    %c2_34 = arith.constant 2 : index
    %c0_35 = arith.constant 0 : index
    %c0_36 = arith.constant 0 : index
    %63 = vector.load %arg1[%c2_34, %c0_35, %c0_36] : memref<4x4x64xf32, #tpu.memory_space<vmem>>, vector<1x4x64xf32>
    %64 = vector.shape_cast %63 : vector<1x4x64xf32> to vector<4x64xf32>
    %cst_37 = arith.constant dense<0.000000e+00> : vector<8x64xf32>
    %65 = tpu.matmul %62, %64, %cst_37 {dimension_numbers = #tpu.dot_dimension_numbers<[1], [0], [0], [1], [0, 0, 1, 1], [], []>} : vector<8x4xf32>, vector<4x64xf32>, vector<8x64xf32> -> vector<8x64xf32>
    %c2_38 = arith.constant 2 : index
    %c0_39 = arith.constant 0 : index
    %c0_40 = arith.constant 0 : index
    %66 = vector.load %arg2[%c2_38, %c0_39, %c0_40] : memref<4x1x64xf32, #tpu.memory_space<vmem>>, vector<1x1x64xf32>
    %67 = vector.shape_cast %66 : vector<1x1x64xf32> to vector<1x64xf32>
    %68 = vector.broadcast %67 : vector<1x64xf32> to vector<8x64xf32>
    %69 = arith.addf %65, %68 : vector<8x64xf32>
    %cst_41 = arith.constant 0.000000e+00 : f32
    %70 = vector.broadcast %cst_41 : f32 to vector<8x64xf32>
    %71 = arith.cmpf ogt, %69, %70 : vector<8x64xf32>
    %cst_42 = arith.constant 0.00999999977 : f32
    %72 = vector.broadcast %cst_42 : f32 to vector<8x64xf32>
    %73 = arith.mulf %72, %69 : vector<8x64xf32>
    %74 = arith.select %71, %69, %73 : vector<8x64xi1>, vector<8x64xf32>
    %c2_43 = arith.constant 2 : index
    %c0_44 = arith.constant 0 : index
    %c0_45 = arith.constant 0 : index
    %75 = vector.load %arg3[%c2_43, %c0_44, %c0_45] : memref<4x64x64xf32, #tpu.memory_space<vmem>>, vector<1x64x64xf32>
    %76 = vector.shape_cast %75 : vector<1x64x64xf32> to vector<64x64xf32>
    %cst_46 = arith.constant dense<0.000000e+00> : vector<8x64xf32>
    %77 = tpu.matmul %74, %76, %cst_46 {dimension_numbers = #tpu.dot_dimension_numbers<[1], [0], [0], [1], [0, 0, 1, 1], [], []>} : vector<8x64xf32>, vector<64x64xf32>, vector<8x64xf32> -> vector<8x64xf32>
    %c2_47 = arith.constant 2 : index
    %c0_48 = arith.constant 0 : index
    %c0_49 = arith.constant 0 : index
    %78 = vector.load %arg4[%c2_47, %c0_48, %c0_49] : memref<4x1x64xf32, #tpu.memory_space<vmem>>, vector<1x1x64xf32>
    %79 = vector.shape_cast %78 : vector<1x1x64xf32> to vector<1x64xf32>
    %80 = vector.broadcast %79 : vector<1x64xf32> to vector<8x64xf32>
    %81 = arith.addf %77, %80 : vector<8x64xf32>
    %cst_50 = arith.constant 0.000000e+00 : f32
    %82 = vector.broadcast %cst_50 : f32 to vector<8x64xf32>
    %83 = arith.cmpf ogt, %81, %82 : vector<8x64xf32>
    %cst_51 = arith.constant 0.00999999977 : f32
    %84 = vector.broadcast %cst_51 : f32 to vector<8x64xf32>
    %85 = arith.mulf %84, %81 : vector<8x64xf32>
    %86 = arith.select %83, %81, %85 : vector<8x64xi1>, vector<8x64xf32>
    %c2_52 = arith.constant 2 : index
    %c0_53 = arith.constant 0 : index
    %c0_54 = arith.constant 0 : index
    %87 = vector.load %arg5[%c2_52, %c0_53, %c0_54] : memref<4x64x8xf32, #tpu.memory_space<vmem>>, vector<1x64x8xf32>
    %88 = vector.shape_cast %87 : vector<1x64x8xf32> to vector<64x8xf32>
    %cst_55 = arith.constant dense<0.000000e+00> : vector<8x8xf32>
    %89 = tpu.matmul %86, %88, %cst_55 {dimension_numbers = #tpu.dot_dimension_numbers<[1], [0], [0], [1], [0, 0, 1, 1], [], []>} : vector<8x64xf32>, vector<64x8xf32>, vector<8x8xf32> -> vector<8x8xf32>
    %c2_56 = arith.constant 2 : index
    %c0_57 = arith.constant 0 : index
    %c0_58 = arith.constant 0 : index
    %90 = vector.load %arg6[%c2_56, %c0_57, %c0_58] : memref<4x1x8xf32, #tpu.memory_space<vmem>>, vector<1x1x8xf32>
    %91 = vector.shape_cast %90 : vector<1x1x8xf32> to vector<1x8xf32>
    %92 = vector.broadcast %91 : vector<1x8xf32> to vector<8x8xf32>
    %93 = arith.addf %89, %92 : vector<8x8xf32>
    %94 = vector.extract_strided_slice %93 {offsets = [0, 0], sizes = [8, 4], strides = [1, 1]} : vector<8x8xf32> to vector<8x4xf32>
    %95 = math.tanh %94 : vector<8x4xf32>
    %96 = vector.broadcast %60 : vector<1x4xf32> to vector<8x4xf32>
    %97 = arith.mulf %95, %96 : vector<8x4xf32>
    %98 = vector.extract_strided_slice %93 {offsets = [0, 4], sizes = [8, 4], strides = [1, 1]} : vector<8x8xf32> to vector<8x4xf32>
    %99 = vector.broadcast %60 : vector<1x4xf32> to vector<8x4xf32>
    %100 = arith.mulf %98, %99 : vector<8x4xf32>
    %101 = arith.subf %53, %100 : vector<8x4xf32>
    %102 = vector.broadcast %60 : vector<1x4xf32> to vector<8x4xf32>
    %103 = arith.mulf %102, %101 : vector<8x4xf32>
    %cst_59 = arith.constant 0.000000e+00 : f32
    %104 = vector.broadcast %cst_59 : f32 to vector<8x4xf32>
    %105 = arith.subf %104, %97 : vector<8x4xf32>
    %106 = math.exp %105 : vector<8x4xf32>
    %107 = arith.mulf %103, %106 : vector<8x4xf32>
    %108 = arith.addf %107, %62 : vector<8x4xf32>
    %cst_60 = arith.constant dense<0.000000e+00> : vector<8xf32>
    %109 = vector.multi_reduction <add>, %97, %cst_60 [1] : vector<8x4xf32> to vector<8xf32>
    %110 = vector.shape_cast %109 : vector<8xf32> to vector<8x1xf32>
    %111 = arith.subf %56, %110 : vector<8x1xf32>
    %c1 = arith.constant 1 : index
    %c0_61 = arith.constant 0 : index
    %c0_62 = arith.constant 0 : index
    %112 = vector.load %arg0[%c1, %c0_61, %c0_62] : memref<4x1x4xf32, #tpu.memory_space<vmem>>, vector<1x1x4xf32>
    %113 = vector.shape_cast %112 : vector<1x1x4xf32> to vector<1x4xf32>
    %cst_63 = arith.constant 1.000000e+00 : f32
    %114 = vector.broadcast %cst_63 : f32 to vector<1x4xf32>
    %115 = arith.subf %114, %113 : vector<1x4xf32>
    %116 = vector.broadcast %113 : vector<1x4xf32> to vector<8x4xf32>
    %117 = arith.mulf %116, %108 : vector<8x4xf32>
    %c1_64 = arith.constant 1 : index
    %c0_65 = arith.constant 0 : index
    %c0_66 = arith.constant 0 : index
    %118 = vector.load %arg1[%c1_64, %c0_65, %c0_66] : memref<4x4x64xf32, #tpu.memory_space<vmem>>, vector<1x4x64xf32>
    %119 = vector.shape_cast %118 : vector<1x4x64xf32> to vector<4x64xf32>
    %cst_67 = arith.constant dense<0.000000e+00> : vector<8x64xf32>
    %120 = tpu.matmul %117, %119, %cst_67 {dimension_numbers = #tpu.dot_dimension_numbers<[1], [0], [0], [1], [0, 0, 1, 1], [], []>} : vector<8x4xf32>, vector<4x64xf32>, vector<8x64xf32> -> vector<8x64xf32>
    %c1_68 = arith.constant 1 : index
    %c0_69 = arith.constant 0 : index
    %c0_70 = arith.constant 0 : index
    %121 = vector.load %arg2[%c1_68, %c0_69, %c0_70] : memref<4x1x64xf32, #tpu.memory_space<vmem>>, vector<1x1x64xf32>
    %122 = vector.shape_cast %121 : vector<1x1x64xf32> to vector<1x64xf32>
    %123 = vector.broadcast %122 : vector<1x64xf32> to vector<8x64xf32>
    %124 = arith.addf %120, %123 : vector<8x64xf32>
    %cst_71 = arith.constant 0.000000e+00 : f32
    %125 = vector.broadcast %cst_71 : f32 to vector<8x64xf32>
    %126 = arith.cmpf ogt, %124, %125 : vector<8x64xf32>
    %cst_72 = arith.constant 0.00999999977 : f32
    %127 = vector.broadcast %cst_72 : f32 to vector<8x64xf32>
    %128 = arith.mulf %127, %124 : vector<8x64xf32>
    %129 = arith.select %126, %124, %128 : vector<8x64xi1>, vector<8x64xf32>
    %c1_73 = arith.constant 1 : index
    %c0_74 = arith.constant 0 : index
    %c0_75 = arith.constant 0 : index
    %130 = vector.load %arg3[%c1_73, %c0_74, %c0_75] : memref<4x64x64xf32, #tpu.memory_space<vmem>>, vector<1x64x64xf32>
    %131 = vector.shape_cast %130 : vector<1x64x64xf32> to vector<64x64xf32>
    %cst_76 = arith.constant dense<0.000000e+00> : vector<8x64xf32>
    %132 = tpu.matmul %129, %131, %cst_76 {dimension_numbers = #tpu.dot_dimension_numbers<[1], [0], [0], [1], [0, 0, 1, 1], [], []>} : vector<8x64xf32>, vector<64x64xf32>, vector<8x64xf32> -> vector<8x64xf32>
    %c1_77 = arith.constant 1 : index
    %c0_78 = arith.constant 0 : index
    %c0_79 = arith.constant 0 : index
    %133 = vector.load %arg4[%c1_77, %c0_78, %c0_79] : memref<4x1x64xf32, #tpu.memory_space<vmem>>, vector<1x1x64xf32>
    %134 = vector.shape_cast %133 : vector<1x1x64xf32> to vector<1x64xf32>
    %135 = vector.broadcast %134 : vector<1x64xf32> to vector<8x64xf32>
    %136 = arith.addf %132, %135 : vector<8x64xf32>
    %cst_80 = arith.constant 0.000000e+00 : f32
    %137 = vector.broadcast %cst_80 : f32 to vector<8x64xf32>
    %138 = arith.cmpf ogt, %136, %137 : vector<8x64xf32>
    %cst_81 = arith.constant 0.00999999977 : f32
    %139 = vector.broadcast %cst_81 : f32 to vector<8x64xf32>
    %140 = arith.mulf %139, %136 : vector<8x64xf32>
    %141 = arith.select %138, %136, %140 : vector<8x64xi1>, vector<8x64xf32>
    %c1_82 = arith.constant 1 : index
    %c0_83 = arith.constant 0 : index
    %c0_84 = arith.constant 0 : index
    %142 = vector.load %arg5[%c1_82, %c0_83, %c0_84] : memref<4x64x8xf32, #tpu.memory_space<vmem>>, vector<1x64x8xf32>
    %143 = vector.shape_cast %142 : vector<1x64x8xf32> to vector<64x8xf32>
    %cst_85 = arith.constant dense<0.000000e+00> : vector<8x8xf32>
    %144 = tpu.matmul %141, %143, %cst_85 {dimension_numbers = #tpu.dot_dimension_numbers<[1], [0], [0], [1], [0, 0, 1, 1], [], []>} : vector<8x64xf32>, vector<64x8xf32>, vector<8x8xf32> -> vector<8x8xf32>
    %c1_86 = arith.constant 1 : index
    %c0_87 = arith.constant 0 : index
    %c0_88 = arith.constant 0 : index
    %145 = vector.load %arg6[%c1_86, %c0_87, %c0_88] : memref<4x1x8xf32, #tpu.memory_space<vmem>>, vector<1x1x8xf32>
    %146 = vector.shape_cast %145 : vector<1x1x8xf32> to vector<1x8xf32>
    %147 = vector.broadcast %146 : vector<1x8xf32> to vector<8x8xf32>
    %148 = arith.addf %144, %147 : vector<8x8xf32>
    %149 = vector.extract_strided_slice %148 {offsets = [0, 0], sizes = [8, 4], strides = [1, 1]} : vector<8x8xf32> to vector<8x4xf32>
    %150 = math.tanh %149 : vector<8x4xf32>
    %151 = vector.broadcast %115 : vector<1x4xf32> to vector<8x4xf32>
    %152 = arith.mulf %150, %151 : vector<8x4xf32>
    %153 = vector.extract_strided_slice %148 {offsets = [0, 4], sizes = [8, 4], strides = [1, 1]} : vector<8x8xf32> to vector<8x4xf32>
    %154 = vector.broadcast %115 : vector<1x4xf32> to vector<8x4xf32>
    %155 = arith.mulf %153, %154 : vector<8x4xf32>
    %156 = arith.subf %108, %155 : vector<8x4xf32>
    %157 = vector.broadcast %115 : vector<1x4xf32> to vector<8x4xf32>
    %158 = arith.mulf %157, %156 : vector<8x4xf32>
    %cst_89 = arith.constant 0.000000e+00 : f32
    %159 = vector.broadcast %cst_89 : f32 to vector<8x4xf32>
    %160 = arith.subf %159, %152 : vector<8x4xf32>
    %161 = math.exp %160 : vector<8x4xf32>
    %162 = arith.mulf %158, %161 : vector<8x4xf32>
    %163 = arith.addf %162, %117 : vector<8x4xf32>
    %cst_90 = arith.constant dense<0.000000e+00> : vector<8xf32>
    %164 = vector.multi_reduction <add>, %152, %cst_90 [1] : vector<8x4xf32> to vector<8xf32>
    %165 = vector.shape_cast %164 : vector<8xf32> to vector<8x1xf32>
    %166 = arith.subf %111, %165 : vector<8x1xf32>
    %c0_91 = arith.constant 0 : index
    %c0_92 = arith.constant 0 : index
    %c0_93 = arith.constant 0 : index
    %167 = vector.load %arg0[%c0_91, %c0_92, %c0_93] : memref<4x1x4xf32, #tpu.memory_space<vmem>>, vector<1x1x4xf32>
    %168 = vector.shape_cast %167 : vector<1x1x4xf32> to vector<1x4xf32>
    %cst_94 = arith.constant 1.000000e+00 : f32
    %169 = vector.broadcast %cst_94 : f32 to vector<1x4xf32>
    %170 = arith.subf %169, %168 : vector<1x4xf32>
    %171 = vector.broadcast %168 : vector<1x4xf32> to vector<8x4xf32>
    %172 = arith.mulf %171, %163 : vector<8x4xf32>
    %c0_95 = arith.constant 0 : index
    %c0_96 = arith.constant 0 : index
    %c0_97 = arith.constant 0 : index
    %173 = vector.load %arg1[%c0_95, %c0_96, %c0_97] : memref<4x4x64xf32, #tpu.memory_space<vmem>>, vector<1x4x64xf32>
    %174 = vector.shape_cast %173 : vector<1x4x64xf32> to vector<4x64xf32>
    %cst_98 = arith.constant dense<0.000000e+00> : vector<8x64xf32>
    %175 = tpu.matmul %172, %174, %cst_98 {dimension_numbers = #tpu.dot_dimension_numbers<[1], [0], [0], [1], [0, 0, 1, 1], [], []>} : vector<8x4xf32>, vector<4x64xf32>, vector<8x64xf32> -> vector<8x64xf32>
    %c0_99 = arith.constant 0 : index
    %c0_100 = arith.constant 0 : index
    %c0_101 = arith.constant 0 : index
    %176 = vector.load %arg2[%c0_99, %c0_100, %c0_101] : memref<4x1x64xf32, #tpu.memory_space<vmem>>, vector<1x1x64xf32>
    %177 = vector.shape_cast %176 : vector<1x1x64xf32> to vector<1x64xf32>
    %178 = vector.broadcast %177 : vector<1x64xf32> to vector<8x64xf32>
    %179 = arith.addf %175, %178 : vector<8x64xf32>
    %cst_102 = arith.constant 0.000000e+00 : f32
    %180 = vector.broadcast %cst_102 : f32 to vector<8x64xf32>
    %181 = arith.cmpf ogt, %179, %180 : vector<8x64xf32>
    %cst_103 = arith.constant 0.00999999977 : f32
    %182 = vector.broadcast %cst_103 : f32 to vector<8x64xf32>
    %183 = arith.mulf %182, %179 : vector<8x64xf32>
    %184 = arith.select %181, %179, %183 : vector<8x64xi1>, vector<8x64xf32>
    %c0_104 = arith.constant 0 : index
    %c0_105 = arith.constant 0 : index
    %c0_106 = arith.constant 0 : index
    %185 = vector.load %arg3[%c0_104, %c0_105, %c0_106] : memref<4x64x64xf32, #tpu.memory_space<vmem>>, vector<1x64x64xf32>
    %186 = vector.shape_cast %185 : vector<1x64x64xf32> to vector<64x64xf32>
    %cst_107 = arith.constant dense<0.000000e+00> : vector<8x64xf32>
    %187 = tpu.matmul %184, %186, %cst_107 {dimension_numbers = #tpu.dot_dimension_numbers<[1], [0], [0], [1], [0, 0, 1, 1], [], []>} : vector<8x64xf32>, vector<64x64xf32>, vector<8x64xf32> -> vector<8x64xf32>
    %c0_108 = arith.constant 0 : index
    %c0_109 = arith.constant 0 : index
    %c0_110 = arith.constant 0 : index
    %188 = vector.load %arg4[%c0_108, %c0_109, %c0_110] : memref<4x1x64xf32, #tpu.memory_space<vmem>>, vector<1x1x64xf32>
    %189 = vector.shape_cast %188 : vector<1x1x64xf32> to vector<1x64xf32>
    %190 = vector.broadcast %189 : vector<1x64xf32> to vector<8x64xf32>
    %191 = arith.addf %187, %190 : vector<8x64xf32>
    %cst_111 = arith.constant 0.000000e+00 : f32
    %192 = vector.broadcast %cst_111 : f32 to vector<8x64xf32>
    %193 = arith.cmpf ogt, %191, %192 : vector<8x64xf32>
    %cst_112 = arith.constant 0.00999999977 : f32
    %194 = vector.broadcast %cst_112 : f32 to vector<8x64xf32>
    %195 = arith.mulf %194, %191 : vector<8x64xf32>
    %196 = arith.select %193, %191, %195 : vector<8x64xi1>, vector<8x64xf32>
    %c0_113 = arith.constant 0 : index
    %c0_114 = arith.constant 0 : index
    %c0_115 = arith.constant 0 : index
    %197 = vector.load %arg5[%c0_113, %c0_114, %c0_115] : memref<4x64x8xf32, #tpu.memory_space<vmem>>, vector<1x64x8xf32>
    %198 = vector.shape_cast %197 : vector<1x64x8xf32> to vector<64x8xf32>
    %cst_116 = arith.constant dense<0.000000e+00> : vector<8x8xf32>
    %199 = tpu.matmul %196, %198, %cst_116 {dimension_numbers = #tpu.dot_dimension_numbers<[1], [0], [0], [1], [0, 0, 1, 1], [], []>} : vector<8x64xf32>, vector<64x8xf32>, vector<8x8xf32> -> vector<8x8xf32>
    %c0_117 = arith.constant 0 : index
    %c0_118 = arith.constant 0 : index
    %c0_119 = arith.constant 0 : index
    %200 = vector.load %arg6[%c0_117, %c0_118, %c0_119] : memref<4x1x8xf32, #tpu.memory_space<vmem>>, vector<1x1x8xf32>
    %201 = vector.shape_cast %200 : vector<1x1x8xf32> to vector<1x8xf32>
    %202 = vector.broadcast %201 : vector<1x8xf32> to vector<8x8xf32>
    %203 = arith.addf %199, %202 : vector<8x8xf32>
    %204 = vector.extract_strided_slice %203 {offsets = [0, 0], sizes = [8, 4], strides = [1, 1]} : vector<8x8xf32> to vector<8x4xf32>
    %205 = math.tanh %204 : vector<8x4xf32>
    %206 = vector.broadcast %170 : vector<1x4xf32> to vector<8x4xf32>
    %207 = arith.mulf %205, %206 : vector<8x4xf32>
    %208 = vector.extract_strided_slice %203 {offsets = [0, 4], sizes = [8, 4], strides = [1, 1]} : vector<8x8xf32> to vector<8x4xf32>
    %209 = vector.broadcast %170 : vector<1x4xf32> to vector<8x4xf32>
    %210 = arith.mulf %208, %209 : vector<8x4xf32>
    %211 = arith.subf %163, %210 : vector<8x4xf32>
    %212 = vector.broadcast %170 : vector<1x4xf32> to vector<8x4xf32>
    %213 = arith.mulf %212, %211 : vector<8x4xf32>
    %cst_120 = arith.constant 0.000000e+00 : f32
    %214 = vector.broadcast %cst_120 : f32 to vector<8x4xf32>
    %215 = arith.subf %214, %207 : vector<8x4xf32>
    %216 = math.exp %215 : vector<8x4xf32>
    %217 = arith.mulf %213, %216 : vector<8x4xf32>
    %218 = arith.addf %217, %172 : vector<8x4xf32>
    %cst_121 = arith.constant dense<0.000000e+00> : vector<8xf32>
    %219 = vector.multi_reduction <add>, %207, %cst_121 [1] : vector<8x4xf32> to vector<8xf32>
    %220 = vector.shape_cast %219 : vector<8xf32> to vector<8x1xf32>
    %221 = arith.subf %166, %220 : vector<8x1xf32>
    %c0_122 = arith.constant 0 : index
    %c0_123 = arith.constant 0 : index
    %222 = vector.load %arg8[%c0_122, %c0_123] : memref<8x4xf32, #tpu.memory_space<vmem>>, vector<8x4xf32>
    tpu.vector_store %arg8[%c0_122, %c0_123], %218 {strides = array<i32>} : memref<8x4xf32, #tpu.memory_space<vmem>>, vector<8x4xf32>,
    %c0_124 = arith.constant 0 : index
    %c0_125 = arith.constant 0 : index
    %223 = vector.load %arg9[%c0_124, %c0_125] : memref<8x1xf32, #tpu.memory_space<vmem>>, vector<8x1xf32>
    tpu.vector_store %arg9[%c0_124, %c0_125], %221 {strides = array<i32>} : memref<8x1xf32, #tpu.memory_space<vmem>>, vector<8x1xf32>,
    return
  }
}

</mosaic_0001>

<bundles_post_ra>
// kernel: tpu_custom_call.1
= control target key start
LH: loop header
LB: loop body
LE: loop exit
PB: predicated region body
PF: predicated region fallthrough
CT: control target
= control target key end

     0   :  { %vm56_vm0 = vcmask 1043456   ;;  %v36_v0 = vlaneseq  ;;  %v1735_v1 = vmov 0.0   ;;  %vm1736_vm1 = vmmov 0   ;;  %s1739_s20 = smov 124   ;;  %s2200_s1 = inlined_call_operand.vmem [shape: f32[4,4,64], index: 1, kind: input, shape index: {}]   ;;  %s2201_s0 = inlined_call_operand.vmem [shape: f32[4,1,4], index: 0, kind: input, shape index: {}]   ;;  %s2202_s3 = inlined_call_operand.vmem [shape: f32[4,64,64], index: 3, kind: input, shape index: {}]   ;;  %s2203_s7 = inlined_call_operand.vmem [shape: f32[8,4], index: 7, kind: input, shape index: {}]   ;;  %s2204_s5 = inlined_call_operand.vmem [shape: f32[4,64,8], index: 5, kind: input, shape index: {}]   ;;  %s2205_s2 = inlined_call_operand.vmem [shape: f32[4,1,64], index: 2, kind: input, shape index: {}]   ;;  %s2206_s4 = inlined_call_operand.vmem [shape: f32[4,1,64], index: 4, kind: input, shape index: {}]   ;;  %s2207_s6 = inlined_call_operand.vmem [shape: f32[4,1,8], index: 6, kind: input, shape index: {}]   ;;  %s2208_s8 = inlined_call_operand.vmem [shape: f32[8,4], index: 8, kind: output, shape index: {0}]   ;;  %s2209_s9 = inlined_call_operand.vmem [shape: f32[8,1], index: 9, kind: output, shape index: {1}]  }
   0x1   :  { %1446 = vmatprep.subr.mxu0 %v1735_v1  ;;  %v1276_v2 = vld [vmem:[%s2200_s1 + $0xc] sm:$0xf]  ;;  %1448 = vmatprep.mubr.msk.f32.mxu0 %vm1736_vm1, %v1735_v1  ;;  %v1281_v4 = vld [vmem:[%s2202_s3 + $0xc0] sm:$0xff]  ;;  %v1283_v6 = vld [vmem:[%s2202_s3 + $0xd0] sm:$0xff]  ;;  %v1737_v8 = vmov 0.0|0.0   ;;  %vm52_vm2 = vcmask 31744  }
   0x2   :  { %1447 = vmatpush3.msk.msra.mxu0 %vm56_vm0, %v1276_v2  ;;  %v37_v3 = vshrl.u32 %v36_v0, 7  ;;  %v1282_v5 = vld [vmem:[%s2202_s3 + $0xc8] sm:$0xff]  ;;  %1467 = vmatprep.mubr.msk.f32.mxu1 %vm1736_vm1, %v1735_v1  ;;  %v1275_v7 = vld [vmem:[%s2201_s0 + $0x3] sm:$0x1]  ;;  %v1284_v10 = vld [vmem:[%s2202_s3 + $0xd8] sm:$0xff]  ;;  %vm150_vm4 = vcmask 523264  }
   0x3   :  { %1618 = vmatprep.subr.bf16.mxu1 %v1737_v8  ;;  %v1619_v9 = vpack.c.bf16 %v1282_v5, %v1281_v4  ;;  %1630 = vmatprep.subr.bf16.mxu0 %v1737_v8  ;;  %v1821_v12 = vld [vmem:[%s2203_s7] sm:$0xff]  ;;  %v1622_v13 = vpack.c.bf16 %v1284_v10, %v1283_v6  ;;  %v1286_v16 = vld [vmem:[%s2202_s3 + $0xe8] sm:$0xff]  ;;  %v1287_v19 = vld [vmem:[%s2202_s3 + $0xf0] sm:$0xff]  ;;  %v34_v40 = vsub.f32 1.0, %v1275_v7  ;;  %s1738_s7 = smov 4   ;;  %vm1265_vm12 = vcmask 7168  }
   0x4   :  { %v1816_v11 = vsub.s32 0, %v37_v3  ;;  %v1285_v15 = vld [vmem:[%s2202_s3 + $0xe0] sm:$0xff]  ;;  %v1288_v20 = vld [vmem:[%s2202_s3 + $0xf8] sm:$0xff]  ;;  %v1293_v23 = vld [vmem:[%s2204_s5 + $0xc8] sm:$0xff] }
   0x5   :  { %1620 = vmatpush3.bf16.msra.mxu1 %v1619_v9  ;;  %v1625_v18 = vpack.c.bf16 %v1286_v16, %v1285_v15  ;;  %v1628_v21 = vpack.c.bf16 %v1288_v20, %v1287_v19  ;;  %v1292_v22 = vld [vmem:[%s2204_s5 + $0xc0] sm:$0xff]  ;;  %v1294_v24 = vld [vmem:[%s2204_s5 + $0xd0] sm:$0xff]  ;;  %v1295_v26 = vld [vmem:[%s2204_s5 + $0xd8] sm:$0xff] }
   0x6   :  { %v39_v14 = vrot.slane %v1275_v7, %v1816_v11  ;;  %1621 = vmatprep.subr.bf16.mxu1 %v1737_v8  ;;  %v1631_v25 = vpack.c.bf16 %v1293_v23, %v1292_v22  ;;  %v1634_v27 = vpack.c.bf16 %v1295_v26, %v1294_v24  ;;  %v1296_v28 = vld [vmem:[%s2204_s5 + $0xe0] sm:$0xff]  ;;  %v1297_v29 = vld [vmem:[%s2204_s5 + $0xe8] sm:$0xff]  ;;  %v1298_v37 = vld [vmem:[%s2204_s5 + $0xf0] sm:$0xff]  ;;  %v322_v41 = vrot.slane %v34_v40, %v1816_v11 }
   0x7   :  { %v1637_v30 = vpack.c.bf16 %v1297_v29, %v1296_v28  ;;  %v1278_v31 = vld [vmem:[%s2205_s2 + $0x3] ss:$0 sm:$0xff]  ;;  %v1299_v38 = vld [vmem:[%s2204_s5 + $0xf8] sm:$0xff]  ;;  %v1304_v51 = vld [vmem:[%s2200_s1 + $0x8] sm:$0xf] }
   0x8   :  { %v1832_v17 = vmul.f32 %v39_v14, %v1821_v12  ;;  %v1640_v39 = vpack.c.bf16 %v1299_v38, %v1298_v37  ;;  %325 = vrot.lane.b32.xlu0 %v322_v41, %s1738_s7  ;;  %v1290_v42 = vld [vmem:[%s2206_s4 + $0x3] ss:$0 sm:$0xff]  ;;  %v1310_v55 = vld [vmem:[%s2202_s3 + $0x88] sm:$0xff]  ;;  %v1311_v56 = vld [vmem:[%s2202_s3 + $0x90] sm:$0xff] }
   0x9   :  { %1623 = vmatpush3.bf16.msra.mxu1 %v1622_v13  ;;  %v1301_v48 = vld [vmem:[%s2207_s6 + $0x3] ss:$0 sm:$0xff]  ;;  %v1312_v59 = vld [vmem:[%s2202_s3 + $0x98] sm:$0xff]  ;;  %v1314_v62 = vld [vmem:[%s2202_s3 + $0xa8] sm:$0xff] }
   0xa   :  { %1449 = vmatmul.mubr.msk.f32.vlgmr.msra.gmra.mrb[0].mxu0 %vm52_vm2, %v1832_v17  ;;  %1624 = vmatprep.subr.bf16.mxu1 %v1737_v8  ;;  %v1309_v54 = vld [vmem:[%s2202_s3 + $0x80] sm:$0xff]  ;;  %v1646_v60 = vpack.c.bf16 %v1312_v59, %v1311_v56  ;;  %v1321_v20 = vld [vmem:[%s2204_s5 + $0x88] sm:$0xff]  ;;  %v1323_v23 = vld [vmem:[%s2204_s5 + $0x98] sm:$0xff] }
   0xb   :  { %1486 = vmatprep.mubr.msk.f32.mxu0 %vm1736_vm1, %v1735_v1  ;;  %1632 = vmatpush3.bf16.msra.mxu0 %v1631_v25  ;;  %v1643_v58 = vpack.c.bf16 %v1310_v55, %v1309_v54  ;;  %v1313_v61 = vld [vmem:[%s2202_s3 + $0xa0] sm:$0xff]  ;;  %v1325_v26 = vld [vmem:[%s2204_s5 + $0xa8] sm:$0xff] }
   0xc   :  { %1633 = vmatprep.subr.bf16.mxu0 %v1737_v8  ;;  %v1649_v63 = vpack.c.bf16 %v1314_v62, %v1313_v61  ;;  %v1303_v7 = vld [vmem:[%s2201_s0 + $0x2] sm:$0x1]  ;;  %v1331_v38 = vld [vmem:[%s2201_s0 + $0x1] sm:$0x1]  ;;  %v1332_v54 = vld [vmem:[%s2200_s1 + $0x4] sm:$0xf] }
   0xd   :  { %1626 = vmatpush3.bf16.msra.mxu1 %v1625_v18  ;;  %v351_v13 = vrot.slane %v1303_v7, %v1816_v11  ;;  %v1316_v18 = vld [vmem:[%s2202_s3 + $0xb8] sm:$0xff]  ;;  %v1324_v25 = vld [vmem:[%s2204_s5 + $0xa0] sm:$0xff]  ;;  %v346_v37 = vsub.f32 1.0, %v1303_v7  ;;  %v655_v40 = vsub.f32 1.0, %v1331_v38  ;;  %v1338_v62 = vld [vmem:[%s2202_s3 + $0x48] sm:$0xff] }
   0xe   :  { %1627 = vmatprep.subr.bf16.mxu1 %v1737_v8  ;;  %v1306_v28 = vld [vmem:[%s2205_s2 + $0x2] ss:$0 sm:$0xff] }
   0xf   :  { %1635 = vmatpush3.bf16.msra.mxu0 %v1634_v27  ;;  %v1661_v27 = vpack.c.bf16 %v1325_v26, %v1324_v25  ;;  %v1337_v61 = vld [vmem:[%s2202_s3 + $0x40] sm:$0xff]  ;;  %v1350_v25 = vld [vmem:[%s2204_s5 + $0x50] sm:$0xff] }
  0x10   :  { %1636 = vmatprep.subr.bf16.mxu0 %v1737_v8 }
  0x11   :  { %1629 = vmatpush3.bf16.msra.mxu1 %v1628_v21  ;;  %v1322_v21 = vld [vmem:[%s2204_s5 + $0x90] sm:$0xff] }
  0x12   :  { %1489 = vmatprep.subr.mxu1 %v1735_v1  ;;  %v1658_v24 = vpack.c.bf16 %v1323_v23, %v1322_v21 }
  0x13   :  { %1638 = vmatpush3.bf16.msra.mxu0 %v1637_v30 }
  0x14   :  { %1639 = vmatprep.subr.bf16.mxu0 %v1737_v8 }
  0x17   :  { %1641 = vmatpush3.bf16.msra.mxu0 %v1640_v39  ;;  %v1984_v39 = vld [vmem:[%s2201_s0] sm:$0x1] }
  0x18   :  { %1642 = vmatprep.subr.bf16.mxu0 %v1737_v8 }
  0x7a   :  { %v326_v50 = vpop.permute.xlu0 %325 }
  0xdd   :  { %v126_v32 = vpop.f32.mrb[0].mxu0 }
  0xde   :  { %v127_v33 = vadd.f32 %v1278_v31, %v126_v32  ;;  %v1450_v34 = vpop.f32.mrb[1].mxu0 }
  0xdf   :  { %v1326_v34 = vld [vmem:[%s2204_s5 + $0xb0] sm:$0xff] }
  0xe0   :  { %vm130_vm3 = vcmp.gt.f32.partialorder %v127_v33, 0.0  ;;  %v131_v35 = vmul.f32 0.01, %v127_v33 }
  0xe2   :  { %v132_v36 = vsel %vm130_vm3, %v127_v33, %v131_v35  ;;  %v1327_v35 = vld [vmem:[%s2204_s5 + $0xb8] sm:$0xff] }
  0xe3   :  { %1468 = vmatmul.mubr.msk.f32.vlgmr.msra.gmra.mrb[0].mxu1 %vm150_vm4, %v132_v36  ;;  %v1664_v36 = vpack.c.bf16 %v1327_v35, %v1326_v34 }
  0xe4   :  { %1491 = vmatprep.mubr.msk.f32.mxu1 %vm1736_vm1, %v1735_v1  ;;  %1490 = vmatpush3.msk.msra.mxu1 %vm56_vm0, %v1304_v51  ;;  %v1329_v51 = vld [vmem:[%s2207_s6 + $0x2] ss:$0 sm:$0xff] }
  0xe5   :  { %1654 = vmatprep.subr.bf16.mxu1 %v1737_v8 }
 0x1b6   :  { %v220_v43 = vpop.f32.mrb[0].mxu1 }
 0x1b7   :  { %v221_v44 = vadd.f32 %v1290_v42, %v220_v43  ;;  %v1469_v45 = vpop.f32.mrb[1].mxu1  ;;  %v631_v42 = vrot.slane %v346_v37, %v1816_v11  ;;  %v1989_v43 = vrot.slane %v655_v40, %v1816_v11  ;;  %v1355_v40 = vld [vmem:[%s2204_s5 + $0x78] sm:$0xff] }
 0x1b8   :  { %v1318_v45 = vld [vmem:[%s2206_s4 + $0x2] ss:$0 sm:$0xff] }
 0x1b9   :  { %vm224_vm5 = vcmp.gt.f32.partialorder %v221_v44, 0.0  ;;  %v225_v46 = vmul.f32 0.01, %v221_v44  ;;  %634 = vrot.lane.b32.xlu1 %v631_v42, %s1738_s7 }
 0x1bb   :  { %v226_v47 = vsel %vm224_vm5, %v221_v44, %v225_v46 }
 0x1bc   :  { %1487 = vmatmul.mubr.msk.f32.vlgmr.msra.gmra.mrb[2].mxu0 %vm150_vm4, %v226_v47 }
 0x1bd   :  { %1510 = vmatprep.mubr.msk.f32.mxu0 %vm1736_vm1, %v1735_v1  ;;  %1644 = vmatpush3.bf16.msra.mxu0 %v1643_v58 }
 0x1be   :  { %1645 = vmatprep.subr.bf16.mxu0 %v1737_v8 }
 0x1c1   :  { %1647 = vmatpush3.bf16.msra.mxu0 %v1646_v60 }
 0x1c2   :  { %1648 = vmatprep.subr.bf16.mxu0 %v1737_v8 }
 0x1c5   :  { %1650 = vmatpush3.bf16.msra.mxu0 %v1649_v63  ;;  %v1339_v63 = vld [vmem:[%s2202_s3 + $0x50] sm:$0xff] }
 0x1c6   :  { %1651 = vmatprep.subr.bf16.mxu0 %v1737_v8 }
 0x28f   :  { %v313_v49 = vpop.f32.mrb[2].mxu0 }
 0x290   :  { %v314_v52 = vadd.f32 %v1301_v48, %v313_v49  ;;  %v1488_v53 = vpop.f32.mrb[3].mxu0 }
 0x291   :  { %v635_v53 = vpop.permute.xlu1 %634 }
 0x292   :  { %v328_v57 = vmul.f32 %v326_v50, %v314_v52  ;;  %1719 = vtanh.f32 %v314_v52 }
 0x294   :  { %330 = vrot.lane.b32.xlu0 %v328_v57, %s1739_s20 }
 0x298   :  { %943 = vrot.lane.b32.xlu0 %v1989_v43, %s1738_s7 }
 0x29c   :  { %v1720_v0 = vpop.eup %1719 }
 0x29d   :  { %v1919_v2 = vmul.f32 %v1720_v0, %v322_v41  ;;  %v1667_v0 = vpack.c.bf16 %v1338_v62, %v1337_v61  ;;  %v1058_v61 = vld [vmem:[%s2202_s3] sm:$0xff]  ;;  %v1059_v62 = vld [vmem:[%s2202_s3 + $0x8] sm:$0xff] }
 0x29f   :  { %v335_v3 = vsub.f32 0.0, %v1919_v2 }
 0x2a1   :  { %v336_v4 = vmul.f32 1.442695, %v335_v3  ;;  %v1340_v3 = vld [vmem:[%s2202_s3 + $0x58] sm:$0xff] }
 0x2a3   :  { %1721 = vpow2.f32 %v336_v4  ;;  %v1670_v4 = vpack.c.bf16 %v1340_v3, %v1339_v63  ;;  %v1060_v63 = vld [vmem:[%s2202_s3 + $0x10] sm:$0xff]  ;;  %v1061_v3 = vld [vmem:[%s2202_s3 + $0x18] sm:$0xff] }
 0x2ad   :  { %v1722_v10 = vpop.eup %1721 }
 0x306   :  { %v331_v5 = vpop.permute.xlu0 %330 }
 0x307   :  { %v333_v6 = vsub.f32 %v1821_v12, %v331_v5  ;;  %v1315_v12 = vld [vmem:[%s2202_s3 + $0xb0] sm:$0xff]  ;;  %v1341_v5 = vld [vmem:[%s2202_s3 + $0x60] sm:$0xff] }
 0x308   :  { %v1652_v19 = vpack.c.bf16 %v1316_v18, %v1315_v12 }
 0x309   :  { %v334_v9 = vmul.f32 %v333_v6, %v322_v41  ;;  %v963_v41 = vsub.f32 1.0, %v1984_v39  ;;  %v1342_v6 = vld [vmem:[%s2202_s3 + $0x68] sm:$0xff] }
 0x30a   :  { %1653 = vmatpush3.bf16.msra.mxu0 %v1652_v19  ;;  %v1673_v7 = vpack.c.bf16 %v1342_v6, %v1341_v5  ;;  %v660_v19 = vrot.slane %v1331_v38, %v1816_v11  ;;  %v1354_v38 = vld [vmem:[%s2204_s5 + $0x70] sm:$0xff]  ;;  %v1063_v5 = vld [vmem:[%s2202_s3 + $0x28] sm:$0xff] }
 0x30b   :  { %v338_v14 = vmul.f32 %v1722_v10, %v334_v9  ;;  %1532 = vmatprep.subr.mxu0 %v1735_v1  ;;  %v1995_v44 = vrot.slane %v963_v41, %v1816_v11  ;;  %v1688_v41 = vpack.c.bf16 %v1355_v40, %v1354_v38 }
 0x30d   :  { %v1928_v15 = vadd.f32 %v338_v14, %v1832_v17  ;;  %v1320_v17 = vld [vmem:[%s2204_s5 + $0x80] sm:$0xff]  ;;  %1245 = vrot.lane.b32.xlu0 %v1995_v44, %s1738_s7 }
 0x30e   :  { %v1655_v22 = vpack.c.bf16 %v1321_v20, %v1320_v17 }
 0x30f   :  { %v1931_v16 = vmul.f32 %v351_v13, %v1928_v15 }
 0x311   :  { %1492 = vmatmul.mubr.msk.f32.vlgmr.msra.gmra.mrb[2].mxu1 %vm52_vm2, %v1931_v16 }
 0x312   :  { %1529 = vmatprep.mubr.msk.f32.mxu1 %vm1736_vm1, %v1735_v1  ;;  %1656 = vmatpush3.bf16.msra.mxu1 %v1655_v22  ;;  %v1344_v22 = vld [vmem:[%s2202_s3 + $0x78] sm:$0xff] }
 0x313   :  { %1657 = vmatprep.subr.bf16.mxu1 %v1737_v8 }
 0x316   :  { %1659 = vmatpush3.bf16.msra.mxu1 %v1658_v24  ;;  %v1349_v24 = vld [vmem:[%s2204_s5 + $0x48] sm:$0xff] }
 0x317   :  { %1660 = vmatprep.subr.bf16.mxu1 %v1737_v8 }
 0x31a   :  { %1662 = vmatpush3.bf16.msra.mxu1 %v1661_v27  ;;  %v1351_v27 = vld [vmem:[%s2204_s5 + $0x58] sm:$0xff] }
 0x31b   :  { %1663 = vmatprep.subr.bf16.mxu1 %v1737_v8 }
 0x31e   :  { %1665 = vmatpush3.bf16.msra.mxu1 %v1664_v36 }
 0x31f   :  { %1666 = vmatprep.subr.bf16.mxu1 %v1737_v8 }
 0x3e4   :  { %v436_v29 = vpop.f32.mrb[2].mxu1 }
 0x3e5   :  { %v437_v30 = vadd.f32 %v1306_v28, %v436_v29  ;;  %v1493_v31 = vpop.f32.mrb[3].mxu1  ;;  %v1682_v28 = vpack.c.bf16 %v1351_v27, %v1350_v25  ;;  %v1352_v29 = vld [vmem:[%s2204_s5 + $0x60] sm:$0xff]  ;;  %v1154_v25 = vld [vmem:[%s2204_s5 + $0x28] sm:$0xff] }
 0x3e6   :  { %v1359_v27 = vld [vmem:[%s2205_s2] ss:$0 sm:$0xff] }
 0x3e7   :  { %vm440_vm6 = vcmp.gt.f32.partialorder %v437_v30, 0.0  ;;  %v441_v32 = vmul.f32 0.01, %v437_v30 }
 0x3e9   :  { %v442_v33 = vsel %vm440_vm6, %v437_v30, %v441_v32  ;;  %v1353_v30 = vld [vmem:[%s2204_s5 + $0x68] sm:$0xff]  ;;  %v1334_v32 = vld [vmem:[%s2205_s2 + $0x1] ss:$0 sm:$0xff] }
 0x3ea   :  { %1511 = vmatmul.mubr.msk.f32.vlgmr.msra.gmra.mrb[4].mxu0 %vm150_vm4, %v442_v33  ;;  %v1685_v31 = vpack.c.bf16 %v1353_v30, %v1352_v29 }
 0x3eb   :  { %1534 = vmatprep.mubr.msk.f32.mxu0 %vm1736_vm1, %v1735_v1  ;;  %1533 = vmatpush3.msk.msra.mxu0 %vm56_vm0, %v1332_v54 }
 0x3ec   :  { %1678 = vmatprep.subr.bf16.mxu0 %v1737_v8 }
 0x4bd   :  { %v529_v46 = vpop.f32.mrb[4].mxu0 }
 0x4be   :  { %v530_v47 = vadd.f32 %v1318_v45, %v529_v46  ;;  %v1512_v48 = vpop.f32.mrb[5].mxu0 }
 0x4c0   :  { %vm533_vm7 = vcmp.gt.f32.partialorder %v530_v47, 0.0  ;;  %v534_v49 = vmul.f32 0.01, %v530_v47 }
 0x4c2   :  { %v535_v50 = vsel %vm533_vm7, %v530_v47, %v534_v49 }
 0x4c3   :  { %1530 = vmatmul.mubr.msk.f32.vlgmr.msra.gmra.mrb[4].mxu1 %vm150_vm4, %v535_v50  ;;  %v1357_v50 = vld [vmem:[%s2207_s6 + $0x1] ss:$0 sm:$0xff] }
 0x4c4   :  { %1553 = vmatprep.mubr.msk.f32.mxu1 %vm1736_vm1, %v1735_v1  ;;  %1668 = vmatpush3.bf16.msra.mxu1 %v1667_v0  ;;  %v1691_v0 = vpack.c.bf16 %v1059_v62, %v1058_v61 }
 0x4c5   :  { %1669 = vmatprep.subr.bf16.mxu1 %v1737_v8 }
 0x4c8   :  { %1671 = vmatpush3.bf16.msra.mxu1 %v1670_v4  ;;  %v1062_v4 = vld [vmem:[%s2202_s3 + $0x20] sm:$0xff] }
 0x4c9   :  { %1672 = vmatprep.subr.bf16.mxu1 %v1737_v8  ;;  %v1697_v6 = vpack.c.bf16 %v1063_v5, %v1062_v4 }
 0x4cc   :  { %1674 = vmatpush3.bf16.msra.mxu1 %v1673_v7 }
 0x4cd   :  { %1675 = vmatprep.subr.bf16.mxu1 %v1737_v8 }
 0x596   :  { %v622_v52 = vpop.f32.mrb[4].mxu1 }
 0x597   :  { %v623_v55 = vadd.f32 %v1329_v51, %v622_v52  ;;  %v1531_v56 = vpop.f32.mrb[5].mxu1  ;;  %v971_v52 = vld [vmem:[%s2200_s1] sm:$0xf] }
 0x599   :  { %1723 = vtanh.f32 %v623_v55  ;;  %v637_v57 = vmul.f32 %v635_v53, %v623_v55  ;;  %v944_v55 = vpop.permute.xlu0 %943 }
 0x59b   :  { %639 = vrot.lane.b32.xlu1 %v637_v57, %s1739_s20 }
 0x5a3   :  { %v1724_v58 = vpop.eup %1723 }
 0x5a4   :  { %v633_v59 = vmul.f32 %v1724_v58, %v631_v42 }
 0x5a6   :  { %v649_v60 = vsel %vm52_vm2, %v633_v59, 0.0  ;;  %v644_v9 = vsub.f32 0.0, %v633_v59 }
 0x5a7   :  { %650 = vadd.xlane.f32.xlu0 %v649_v60  ;;  %v340_v60 = vsel %vm52_vm2, %v1919_v2, 0.0  ;;  %v1694_v2 = vpack.c.bf16 %v1061_v3, %v1060_v63 }
 0x5a8   :  { %v645_v10 = vmul.f32 1.442695, %v644_v9 }
 0x5aa   :  { %1725 = vpow2.f32 %v645_v10 }
 0x5b4   :  { %v1726_v18 = vpop.eup %1725 }
 0x60d   :  { %v640_v13 = vpop.permute.xlu1 %639 }
 0x60e   :  { %v642_v14 = vsub.f32 %v1928_v15, %v640_v13  ;;  %v1343_v15 = vld [vmem:[%s2202_s3 + $0x70] sm:$0xff] }
 0x60f   :  { %v1676_v23 = vpack.c.bf16 %v1344_v22, %v1343_v15 }
 0x610   :  { %v643_v12 = vmul.f32 %v642_v14, %v631_v42  ;;  %v1346_v42 = vld [vmem:[%s2206_s4 + $0x1] ss:$0 sm:$0xff] }
 0x611   :  { %1677 = vmatpush3.bf16.msra.mxu1 %v1676_v23  ;;  %v1152_v23 = vld [vmem:[%s2204_s5 + $0x18] sm:$0xff] }
 0x612   :  { %v647_v17 = vmul.f32 %v1726_v18, %v643_v12  ;;  %1575 = vmatprep.subr.mxu1 %v1735_v1  ;;  %v968_v18 = vrot.slane %v1984_v39, %v1816_v11  ;;  %v1065_v11 = vld [vmem:[%s2202_s3 + $0x38] sm:$0xff] }
 0x614   :  { %v2039_v20 = vadd.f32 %v647_v17, %v1931_v16  ;;  %v1348_v16 = vld [vmem:[%s2204_s5 + $0x40] sm:$0xff] }
 0x615   :  { %v1679_v26 = vpack.c.bf16 %v1349_v24, %v1348_v16  ;;  %v1153_v24 = vld [vmem:[%s2204_s5 + $0x20] sm:$0xff] }
 0x616   :  { %v2042_v21 = vmul.f32 %v660_v19, %v2039_v20 }
 0x618   :  { %1535 = vmatmul.mubr.msk.f32.vlgmr.msra.gmra.mrb[6].mxu0 %vm52_vm2, %v2042_v21 }
 0x619   :  { %1572 = vmatprep.mubr.msk.f32.mxu0 %vm1736_vm1, %v1735_v1  ;;  %1680 = vmatpush3.bf16.msra.mxu0 %v1679_v26  ;;  %v1709_v26 = vpack.c.bf16 %v1154_v25, %v1153_v24 }
 0x61a   :  { %1681 = vmatprep.subr.bf16.mxu0 %v1737_v8 }
 0x61d   :  { %1683 = vmatpush3.bf16.msra.mxu0 %v1682_v28 }
 0x61e   :  { %1684 = vmatprep.subr.bf16.mxu0 %v1737_v8 }
 0x621   :  { %1686 = vmatpush3.bf16.msra.mxu0 %v1685_v31 }
 0x622   :  { %1687 = vmatprep.subr.bf16.mxu0 %v1737_v8 }
 0x625   :  { %1689 = vmatpush3.bf16.msra.mxu0 %v1688_v41 }
 0x626   :  { %1690 = vmatprep.subr.bf16.mxu0 %v1737_v8 }
 0x6eb   :  { %v745_v33 = vpop.f32.mrb[6].mxu0 }
 0x6ec   :  { %v746_v34 = vadd.f32 %v1334_v32, %v745_v33  ;;  %v1536_v35 = vpop.f32.mrb[7].mxu0  ;;  %v1155_v33 = vld [vmem:[%s2204_s5 + $0x30] sm:$0xff] }
 0x6ed   :  { %v1362_v35 = vld [vmem:[%s2206_s4] ss:$0 sm:$0xff] }
 0x6ee   :  { %vm749_vm8 = vcmp.gt.f32.partialorder %v746_v34, 0.0  ;;  %v750_v36 = vmul.f32 0.01, %v746_v34 }
 0x6f0   :  { %v751_v37 = vsel %vm749_vm8, %v746_v34, %v750_v36 }
 0x6f1   :  { %1554 = vmatmul.mubr.msk.f32.vlgmr.msra.gmra.mrb[6].mxu1 %vm150_vm4, %v751_v37 }
 0x6f2   :  { %1577 = vmatprep.mubr.msk.f32.mxu1 %vm1736_vm1, %v1735_v1  ;;  %1576 = vmatpush3.msk.msra.mxu1 %vm56_vm0, %v971_v52 }
 0x6f3   :  { %1702 = vmatprep.subr.bf16.mxu1 %v1737_v8 }
 0x7c4   :  { %v838_v45 = vpop.f32.mrb[6].mxu1 }
 0x7c5   :  { %v839_v46 = vadd.f32 %v1346_v42, %v838_v45  ;;  %v1555_v47 = vpop.f32.mrb[7].mxu1  ;;  %v1364_v42 = vld [vmem:[%s2207_s6] ss:$0 sm:$0xff] }
 0x7c7   :  { %vm842_vm9 = vcmp.gt.f32.partialorder %v839_v46, 0.0  ;;  %v843_v48 = vmul.f32 0.01, %v839_v46 }
 0x7c9   :  { %v844_v49 = vsel %vm842_vm9, %v839_v46, %v843_v48  ;;  %v1246_v48 = vpop.permute.xlu0 %1245 }
 0x7ca   :  { %1573 = vmatmul.mubr.msk.f32.vlgmr.msra.gmra.mrb[8].mxu0 %vm150_vm4, %v844_v49 }
 0x7cb   :  { %1596 = vmatprep.mubr.msk.f32.mxu0 %vm1736_vm1, %v1735_v1  ;;  %1692 = vmatpush3.bf16.msra.mxu0 %v1691_v0 }
 0x7cc   :  { %1693 = vmatprep.subr.bf16.mxu0 %v1737_v8 }
 0x7cf   :  { %1695 = vmatpush3.bf16.msra.mxu0 %v1694_v2 }
 0x7d0   :  { %1696 = vmatprep.subr.bf16.mxu0 %v1737_v8 }
 0x7d3   :  { %1698 = vmatpush3.bf16.msra.mxu0 %v1697_v6 }
 0x7d4   :  { %1699 = vmatprep.subr.bf16.mxu0 %v1737_v8 }
 0x89d   :  { %v931_v51 = vpop.f32.mrb[8].mxu0 }
 0x89e   :  { %v932_v53 = vadd.f32 %v1357_v50, %v931_v51  ;;  %v1574_v54 = vpop.f32.mrb[9].mxu0 }
 0x8a0   :  { %1727 = vtanh.f32 %v932_v53  ;;  %v946_v56 = vmul.f32 %v944_v55, %v932_v53  ;;  %v651_v55 = vpop.xlane.xlu0 %650 }
 0x8a2   :  { %948 = vrot.lane.b32.xlu1 %v946_v56, %s1739_s20 }
 0x8aa   :  { %v1728_v57 = vpop.eup %1727 }
 0x8ab   :  { %v942_v58 = vmul.f32 %v1728_v57, %v1989_v43 }
 0x8ad   :  { %v958_v59 = vsel %vm52_vm2, %v942_v58, 0.0  ;;  %v953_v7 = vsub.f32 0.0, %v942_v58 }
 0x8ae   :  { %959 = vadd.xlane.f32.xlu0 %v958_v59 }
 0x8af   :  { %v954_v9 = vmul.f32 1.442695, %v953_v7 }
 0x8b1   :  { %1729 = vpow2.f32 %v954_v9 }
 0x8bb   :  { %v1730_v12 = vpop.eup %1729 }
 0x8c6   :  { %341 = vadd.xlane.f32.xlu1 %v340_v60 }
 0x914   :  { %v949_v10 = vpop.permute.xlu1 %948 }
 0x915   :  { %v951_v13 = vsub.f32 %v2039_v20, %v949_v10  ;;  %v1149_v20 = vld [vmem:[%s2204_s5] sm:$0xff] }
 0x917   :  { %v952_v14 = vmul.f32 %v951_v13, %v1989_v43  ;;  %v1064_v43 = vld [vmem:[%s2202_s3 + $0x30] sm:$0xff] }
 0x918   :  { %v1700_v39 = vpack.c.bf16 %v1065_v11, %v1064_v43 }
 0x919   :  { %v956_v19 = vmul.f32 %v1730_v12, %v952_v14 }
 0x91a   :  { %1701 = vmatpush3.bf16.msra.mxu0 %v1700_v39 }
 0x91b   :  { %v2134_v17 = vadd.f32 %v956_v19, %v2042_v21  ;;  %v1150_v21 = vld [vmem:[%s2204_s5 + $0x8] sm:$0xff] }
 0x91c   :  { %v1703_v22 = vpack.c.bf16 %v1150_v21, %v1149_v20 }
 0x91d   :  { %v2137_v15 = vmul.f32 %v968_v18, %v2134_v17 }
 0x91f   :  { %1578 = vmatmul.mubr.msk.f32.vlgmr.msra.gmra.mrb[8].mxu1 %vm52_vm2, %v2137_v15 }
 0x920   :  { %1615 = vmatprep.mubr.msk.f32.mxu1 %vm1736_vm1, %v1735_v1  ;;  %v1151_v1 = vld [vmem:[%s2204_s5 + $0x10] sm:$0xff]  ;;  %1704 = vmatpush3.bf16.msra.mxu1 %v1703_v22 }
 0x921   :  { %v1706_v16 = vpack.c.bf16 %v1152_v23, %v1151_v1  ;;  %1705 = vmatprep.subr.bf16.mxu1 %v1737_v8 }
 0x924   :  { %1707 = vmatpush3.bf16.msra.mxu1 %v1706_v16 }
 0x925   :  { %1708 = vmatprep.subr.bf16.mxu1 %v1737_v8 }
 0x928   :  { %1710 = vmatpush3.bf16.msra.mxu1 %v1709_v26 }
 0x929   :  { %1711 = vmatprep.subr.bf16.mxu1 %v1737_v8  ;;  %v1156_v8 = vld [vmem:[%s2204_s5 + $0x38] sm:$0xff] }
 0x92a   :  { %v1712_v34 = vpack.c.bf16 %v1156_v8, %v1155_v33 }
 0x92c   :  { %1713 = vmatpush3.bf16.msra.mxu1 %v1712_v34 }
 0x93b   :  { %v960_v56 = vpop.xlane.xlu0 %959 }
 0x953   :  { %v342_v63 = vpop.xlane.xlu1 %341 }
 0x954   :  { %v343_v0 = vsub.f32 0.0, %v342_v63 }
 0x956   :  { %v652_v3 = vsub.f32 %v343_v0, %v651_v55 }
 0x958   :  { %v961_v2 = vsub.f32 %v652_v3, %v960_v56 }
 0x9f2   :  { %v1051_v28 = vpop.f32.mrb[8].mxu1 }
 0x9f3   :  { %v1052_v29 = vadd.f32 %v1359_v27, %v1051_v28  ;;  %v1579_v30 = vpop.f32.mrb[9].mxu1 }
 0x9f5   :  { %vm1055_vm10 = vcmp.gt.f32.partialorder %v1052_v29, 0.0  ;;  %v1056_v31 = vmul.f32 0.01, %v1052_v29 }
 0x9f7   :  { %v1057_v32 = vsel %vm1055_vm10, %v1052_v29, %v1056_v31 }
 0x9f8   :  { %1597 = vmatmul.mubr.msk.f32.vlgmr.msra.gmra.mrb[10].mxu0 %vm150_vm4, %v1057_v32 }
 0xacb   :  { %v1142_v36 = vpop.f32.mrb[10].mxu0 }
 0xacc   :  { %v1143_v37 = vadd.f32 %v1362_v35, %v1142_v36  ;;  %v1598_v38 = vpop.f32.mrb[11].mxu0 }
 0xace   :  { %vm1146_vm11 = vcmp.gt.f32.partialorder %v1143_v37, 0.0  ;;  %v1147_v40 = vmul.f32 0.01, %v1143_v37 }
 0xad0   :  { %v1148_v41 = vsel %vm1146_vm11, %v1143_v37, %v1147_v40 }
 0xad1   :  { %1616 = vmatmul.mubr.msk.f32.vlgmr.msra.gmra.mrb[10].mxu1 %vm150_vm4, %v1148_v41 }
 0xba4   :  { %v1233_v45 = vpop.f32.mrb[10].mxu1 }
 0xba5   :  { %v1234_v46 = vadd.f32 %v1364_v42, %v1233_v45  ;;  %v1617_v47 = vpop.f32.mrb[11].mxu1 }
 0xba7   :  { %1731 = vtanh.f32 %v1234_v46  ;;  %v1248_v49 = vmul.f32 %v1246_v48, %v1234_v46 }
 0xba9   :  { %1250 = vrot.lane.b32.xlu0 %v1248_v49, %s1739_s20 }
 0xbb1   :  { %v1732_v50 = vpop.eup %1731 }
 0xbb2   :  { %v1244_v51 = vmul.f32 %v1732_v50, %v1995_v44 }
 0xbb4   :  { %v1260_v52 = vsel %vm52_vm2, %v1244_v51, 0.0  ;;  %v1255_v53 = vsub.f32 0.0, %v1244_v51 }
 0xbb5   :  { %1261 = vadd.xlane.f32.xlu1 %v1260_v52 }
 0xbb6   :  { %v1256_v54 = vmul.f32 1.442695, %v1255_v53 }
 0xbb8   :  { %1733 = vpow2.f32 %v1256_v54 }
 0xbc2   :  { %v1734_v60 = vpop.eup %1733 }
 0xc1b   :  { %v1251_v57 = vpop.permute.xlu0 %1250 }
 0xc1c   :  { %v1253_v58 = vsub.f32 %v2134_v17, %v1251_v57 }
 0xc1e   :  { %v1254_v59 = vmul.f32 %v1253_v58, %v1995_v44 }
 0xc20   :  { %v1258_v61 = vmul.f32 %v1734_v60, %v1254_v59 }
 0xc22   :  { %v1259_v62 = vadd.f32 %v1258_v61, %v2137_v15 }
 0xc24   :  { %1264 = vst.msk [vmem:[%s2208_s8] sm:$0xff] %vm52_vm2, %v1259_v62 }
 0xc42   :  { %v1262_v4 = vpop.xlane.xlu1 %1261 }
 0xc43   :  { %v1263_v5 = vsub.f32 %v961_v2, %v1262_v4 }
 0xc45   :  { %1266 = vst.msk [vmem:[%s2209_s9] sm:$0xff] %vm1265_vm12, %v1263_v5 }

</bundles_post_ra>
